<compile_context>
chip_gen: v6e
topology: v6e:2x2x1
jax: 0.10.0
libtpu: 0.0.40
codegen_flags: <defaults>
</compile_context>

<pallas_src>
import functools

import jax
import jax.numpy as jnp
from jax import lax
from jax.experimental import pallas as pl
from jax.experimental.pallas import tpu as pltpu

EPSILON = 1e-6
_LANE = 128
_SUBLANE = 8


def _round_up(x, m):
    return ((x + m - 1) // m) * m


# ---------------------------------------------------------------------------
# Kernel A: transposed layout (C, N) — classes on sublanes, samples lane-dense.
# Used when C < 128.
# ---------------------------------------------------------------------------
def _dice_partials_kernel_cn(tgt_ref, x_ref, inter_ref, denom_ref, *,
                             ignore_index, block_n, blocks_per_split):
    s = pl.program_id(0)          # parallel split (megacore sharding on v7x)
    j = pl.program_id(1)          # reduction step within this split

    @pl.when(j == 0)
    def _():
        inter_ref[...] = jnp.zeros_like(inter_ref)
        denom_ref[...] = jnp.zeros_like(denom_ref)

    x = x_ref[...].astype(jnp.float32)                      # (C, TB)
    # softmax over the class (sublane) axis
    m = jnp.max(x, axis=0, keepdims=True)
    e = jnp.exp(x - m)
    p = e * pl.reciprocal(jnp.sum(e, axis=0, keepdims=True), approx=False)

    start = pl.multiple_of((s * blocks_per_split + j) * block_n, _LANE)
    tgt = tgt_ref[:, pl.ds(start, block_n)]                 # (1, TB) int32
    valid = tgt != ignore_index                             # (1, TB) bool

    class_ids = lax.broadcasted_iota(jnp.int32, x.shape, 0)           # (C, TB)
    onehot = jnp.where(jnp.logical_and(class_ids == tgt, valid), 1.0, 0.0)
    pm = jnp.where(valid, p, 0.0)                           # (C, TB)

    # onehot already folds the valid mask and is {0,1}:
    #   sum(pm*onehot) == sum(p*onehot), sum(onehot*onehot) == sum(onehot)
    inter_ref[...] += jnp.sum(p * onehot, axis=1, keepdims=True)      # (C, 1)
    denom_ref[...] += (jnp.sum(pm * pm, axis=1, keepdims=True)
                       + jnp.sum(onehot, axis=1, keepdims=True))


# ---------------------------------------------------------------------------
# Kernel B: natural layout (N, C) — samples on sublanes, classes lane-dense.
# Used when C >= 128 (already lane-dense; avoids the wrapper transpose).
# ---------------------------------------------------------------------------
def _dice_partials_kernel_nc(tgt_ref, x_ref, inter_ref, denom_ref, *,
                             ignore_index, block_n, blocks_per_split):
    s = pl.program_id(0)
    j = pl.program_id(1)

    @pl.when(j == 0)
    def _():
        inter_ref[...] = jnp.zeros_like(inter_ref)
        denom_ref[...] = jnp.zeros_like(denom_ref)

    x = x_ref[...].astype(jnp.float32)                      # (TB, C)
    m = jnp.max(x, axis=1, keepdims=True)
    e = jnp.exp(x - m)
    p = e * pl.reciprocal(jnp.sum(e, axis=1, keepdims=True), approx=False)

    start = pl.multiple_of((s * blocks_per_split + j) * block_n, _SUBLANE)
    tgt = tgt_ref[pl.ds(start, block_n), :]                 # (TB, 1) int32
    valid = tgt != ignore_index

    class_ids = lax.broadcasted_iota(jnp.int32, x.shape, 1)           # (TB, C)
    onehot = jnp.where(jnp.logical_and(class_ids == tgt, valid), 1.0, 0.0)
    pm = jnp.where(valid, p, 0.0)

    inter_ref[...] += jnp.sum(p * onehot, axis=0, keepdims=True)      # (1, C)
    denom_ref[...] += (jnp.sum(pm * pm, axis=0, keepdims=True)
                       + jnp.sum(onehot, axis=0, keepdims=True))


# ---------------------------------------------------------------------------
# Tiling plan: biggest aligned sample block under a ~2 MiB-per-buffer budget.
# With double-buffered inputs plus per-tile f32 temporaries and the resident
# targets this keeps peak VMEM far below the 32 MiB limit requested below,
# which is safe on v5e / v6e (128 MiB physical) and v7x (64 MiB physical).
# ---------------------------------------------------------------------------
def _plan_tiles(n, c, itemsize, *, align, n_split_target=4,
                tile_bytes=2 << 20, block_override=None, n_split_override=None):
    if block_override is not None:
        block = int(block_override)
    else:
        block = tile_bytes // (c * itemsize)
    block = min(block, _round_up(n, align))   # don't over-pad tiny inputs
    block = max(align, (block // align) * align)
    total_blocks = -(-n // block)
    n_split = n_split_override if n_split_override is not None else n_split_target
    n_split = max(1, min(int(n_split), total_blocks))
    blocks_per_split = -(-total_blocks // n_split)
    n_pad = n_split * blocks_per_split * block
    return block, n_split, blocks_per_split, n_pad


def dice_loss(predicted, target, *, ignore_index, weight=None,
              block=None, n_split=None):
    """predicted: (N, C) logits (f32 or bf16); target: (N,) integer labels."""
    n, c = predicted.shape
    itemsize = predicted.dtype.itemsize
    use_transposed = c < _LANE              # lane-dense over samples when C is small
    align = _LANE if use_transposed else _SUBLANE

    blk, ns, bps, n_pad = _plan_tiles(
        n, c, itemsize, align=align,
        block_override=block, n_split_override=n_split)

    tgt = target.astype(jnp.int32)
    pad = n_pad - n
    if pad:
        predicted = jnp.concatenate(
            [predicted, jnp.zeros((pad, c), predicted.dtype)], axis=0)
        tgt = jnp.concatenate(
            [tgt, jnp.full((pad,), ignore_index, jnp.int32)], axis=0)

    if use_transposed:
        x = predicted.T                                     # (C, N_pad)
        tgt2d = tgt.reshape(1, n_pad)
        x_spec = pl.BlockSpec((c, blk), lambda s, j: (0, s * bps + j))
        t_spec = pl.BlockSpec((1, n_pad), lambda s, j: (0, 0))   # resident
        out_shape = jax.ShapeDtypeStruct((ns, c, 1), jnp.float32)
        out_spec_i = pl.BlockSpec((None, c, 1), lambda s, j: (s, 0, 0))
        out_spec_d = pl.BlockSpec((None, c, 1), lambda s, j: (s, 0, 0))
        kernel = functools.partial(_dice_partials_kernel_cn,
                                   ignore_index=ignore_index,
                                   block_n=blk, blocks_per_split=bps)
    else:
        x = predicted                                       # (N_pad, C)
        tgt2d = tgt.reshape(n_pad, 1)
        x_spec = pl.BlockSpec((blk, c), lambda s, j: (s * bps + j, 0))
        t_spec = pl.BlockSpec((n_pad, 1), lambda s, j: (0, 0))   # resident
        out_shape = jax.ShapeDtypeStruct((ns, 1, c), jnp.float32)
        out_spec_i = pl.BlockSpec((None, 1, c), lambda s, j: (s, 0, 0))
        out_spec_d = pl.BlockSpec((None, 1, c), lambda s, j: (s, 0, 0))
        kernel = functools.partial(_dice_partials_kernel_nc,
                                   ignore_index=ignore_index,
                                   block_n=blk, blocks_per_split=bps)

    inter_p, denom_p = pl.pallas_call(
        kernel,
        out_shape=(out_shape, out_shape),
        grid_spec=pltpu.PrefetchScalarGridSpec(
            num_scalar_prefetch=0,
            grid=(ns, bps),
            in_specs=[t_spec, x_spec],
            out_specs=[out_spec_i, out_spec_d],
        ),
        compiler_params=pltpu.CompilerParams(
            dimension_semantics=("parallel", "arbitrary"),
            vmem_limit_bytes=32 * 1024 * 1024,
        ),
    )(tgt2d, x)

    # Tiny finalize in XLA: per-split partials -> per-class sums -> scalar loss.
    inter = jnp.sum(inter_p.reshape(ns, c), axis=0)
    denom = jnp.sum(denom_p.reshape(ns, c), axis=0)
    if weight is not None:
        inter = weight * inter
        denom = weight * denom
    dice = 2.0 * inter / jnp.maximum(denom, EPSILON)
    return 1.0 - jnp.mean(dice)


def dice_loss_ref(predicted, target, *, ignore_index, weight=None):
    """Pure-JAX reference mirroring the PyTorch module."""
    p = jax.nn.softmax(predicted.astype(jnp.float32), axis=1)
    n, c = p.shape
    valid = (target != ignore_index)[:, None]
    onehot = jnp.where(valid, jax.nn.one_hot(target, c, dtype=jnp.float32), 0.0)
    pm = jnp.where(valid, p, 0.0)
    intersect = jnp.sum(pm * onehot, axis=0)
    denom = jnp.sum(pm * pm, axis=0) + jnp.sum(onehot * onehot, axis=0)
    if weight is not None:
        intersect = weight * intersect
        denom = weight * denom
    dice = 2.0 * intersect / jnp.maximum(denom, EPSILON)
    return 1.0 - jnp.mean(dice)


if __name__ == "__main__":
    IGNORE_INDEX = 255
    root = jax.random.PRNGKey(0)

    def run_case(case_id, n, c, dtype, block=None, n_split=None, tol=1e-5):
        k1, k2 = jax.random.split(jax.random.fold_in(root, case_id))
        logits = jax.random.normal(k1, (n, c), dtype=jnp.float32).astype(dtype)
        labels = jax.random.randint(k2, (n,), 0, c, dtype=jnp.int32)
        labels = labels.at[::7].set(IGNORE_INDEX)   # a few "ignore" samples
        got = dice_loss(logits, labels, ignore_index=IGNORE_INDEX,
                        block=block, n_split=n_split)
        got = jax.block_until_ready(got)
        want = dice_loss_ref(logits, labels, ignore_index=IGNORE_INDEX)
        assert jnp.allclose(got, want, atol=tol, rtol=tol), (n, c, got, want)

    # 1) small-C path (classes on sublanes, samples lane-dense), single block
    run_case(0, 16, 8, jnp.float32)
    # 2) small-C path, multi-block reduction + parallel split + padded tail rows
    run_case(1, 1000, 8, jnp.float32, block=128, n_split=2)
    # 3) small-C path with bf16 logits (in-kernel upcast, half the HBM bytes)
    run_case(2, 256, 8, jnp.bfloat16, block=128, n_split=2)
    # 4) wide-C path (classes already lane-dense), multi-block + split + padding
    run_case(3, 250, 128, jnp.float32, block=64, n_split=2)

    print("KERNEL_OK")
</pallas_src>

<mosaic_0001>
module attributes {stable_mosaic.version = 11 : i64} {
  func.func @_dice_partials_kernel_cn(%arg0: i32, %arg1: i32, %arg2: memref<1x128xi32, #tpu.memory_space<vmem>>, %arg3: memref<8x128xf32, #tpu.memory_space<vmem>>, %arg4: memref<1x8x1xf32, #tpu.memory_space<vmem>>, %arg5: memref<1x8x1xf32, #tpu.memory_space<vmem>>) attributes {dimension_semantics = [#tpu.dimension_semantics<parallel>, #tpu.dimension_semantics<arbitrary>], iteration_bounds = array<i64: 1, 1>, scalar_prefetch = 0 : i64, scratch_operands = 0 : i64, tpu.core_type = #tpu.core_type<tc>, window_params = [{pipeline_mode = #tpu.pipeline_mode<synchronous>, transform_indices = @transform_0, window_bounds = array<i64: 1, 128>}, {transform_indices = @transform_1, window_bounds = array<i64: 8, 128>}, {transform_indices = @transform_2, window_bounds = array<i64: 1, 8, 1>}, {transform_indices = @transform_3, window_bounds = array<i64: 1, 8, 1>}]} {
    %c0_i32 = arith.constant 0 : i32
    %0 = arith.cmpi eq, %arg1, %c0_i32 : i32
    %1 = arith.extui %0 : i1 to i32
    %c0_i32_0 = arith.constant 0 : i32
    %2 = arith.cmpi ne, %1, %c0_i32_0 : i32
    scf.if %2 {
      %cst_22 = arith.constant 0.000000e+00 : f32
      %55 = vector.broadcast %cst_22 : f32 to vector<8x1xf32>
      %c0_23 = arith.constant 0 : index
      %c0_24 = arith.constant 0 : index
      %c0_25 = arith.constant 0 : index
      %56 = vector.load %arg4[%c0_23, %c0_24, %c0_25] : memref<1x8x1xf32, #tpu.memory_space<vmem>>, vector<1x8x1xf32>
      %57 = vector.shape_cast %56 : vector<1x8x1xf32> to vector<8x1xf32>
      %58 = vector.shape_cast %55 : vector<8x1xf32> to vector<1x8x1xf32>
      tpu.vector_store %arg4[%c0_23, %c0_24, %c0_25], %58 {strides = array<i32>} : memref<1x8x1xf32, #tpu.memory_space<vmem>>, vector<1x8x1xf32>,
      %cst_26 = arith.constant 0.000000e+00 : f32
      %59 = vector.broadcast %cst_26 : f32 to vector<8x1xf32>
      %c0_27 = arith.constant 0 : index
      %c0_28 = arith.constant 0 : index
      %c0_29 = arith.constant 0 : index
      %60 = vector.load %arg5[%c0_27, %c0_28, %c0_29] : memref<1x8x1xf32, #tpu.memory_space<vmem>>, vector<1x8x1xf32>
      %61 = vector.shape_cast %60 : vector<1x8x1xf32> to vector<8x1xf32>
      %62 = vector.shape_cast %59 : vector<8x1xf32> to vector<1x8x1xf32>
      tpu.vector_store %arg5[%c0_27, %c0_28, %c0_29], %62 {strides = array<i32>} : memref<1x8x1xf32, #tpu.memory_space<vmem>>, vector<1x8x1xf32>,
    } else {
    }
    %c0 = arith.constant 0 : index
    %c0_1 = arith.constant 0 : index
    %3 = vector.load %arg3[%c0, %c0_1] : memref<8x128xf32, #tpu.memory_space<vmem>>, vector<8x128xf32>
    %cst = arith.constant dense<0xFF800000> : vector<128xf32>
    %4 = vector.multi_reduction <maximumf>, %3, %cst [0] : vector<8x128xf32> to vector<128xf32>
    %5 = vector.shape_cast %4 : vector<128xf32> to vector<1x128xf32>
    %6 = vector.broadcast %5 : vector<1x128xf32> to vector<8x128xf32>
    %7 = arith.subf %3, %6 : vector<8x128xf32>
    %8 = math.exp %7 : vector<8x128xf32>
    %cst_2 = arith.constant dense<0.000000e+00> : vector<128xf32>
    %9 = vector.multi_reduction <add>, %8, %cst_2 [0] : vector<8x128xf32> to vector<128xf32>
    %10 = vector.shape_cast %9 : vector<128xf32> to vector<1x128xf32>
    %11 = tpu.reciprocal %10 : vector<1x128xf32> -> vector<1x128xf32>
    %12 = vector.broadcast %11 : vector<1x128xf32> to vector<8x128xf32>
    %13 = arith.mulf %8, %12 : vector<8x128xf32>
    %c1_i32 = arith.constant 1 : i32
    %14 = arith.muli %arg0, %c1_i32 : i32
    %15 = arith.addi %14, %arg1 : i32
    %c128_i32 = arith.constant 128 : i32
    %16 = arith.muli %15, %c128_i32 : i32
    %17 = tpu.assume_multiple %16, 128 : i32
    %c0_3 = arith.constant 0 : index
    %18 = arith.index_cast %17 : i32 to index
    %19 = vector.load %arg2[%c0_3, %18] : memref<1x128xi32, #tpu.memory_space<vmem>>, vector<1x128xi32>
    %c255_i32 = arith.constant 255 : i32
    %20 = vector.broadcast %c255_i32 : i32 to vector<1x128xi32>
    %21 = arith.cmpi ne, %19, %20 : vector<1x128xi32>
    %22 = tpu.iota {dimensions = array<i32: 0>} : vector<8x128xi32>
    %23 = vector.broadcast %19 : vector<1x128xi32> to vector<8x128xi32>
    %24 = arith.cmpi eq, %22, %23 : vector<8x128xi32>
    %25 = vector.broadcast %21 : vector<1x128xi1> to vector<8x128xi1>
    %26 = arith.andi %24, %25 : vector<8x128xi1>
    %cst_4 = arith.constant 1.000000e+00 : f32
    %cst_5 = arith.constant 0.000000e+00 : f32
    %27 = vector.broadcast %cst_4 : f32 to vector<8x128xf32>
    %28 = vector.broadcast %cst_5 : f32 to vector<8x128xf32>
    %29 = arith.select %26, %27, %28 : vector<8x128xi1>, vector<8x128xf32>
    %cst_6 = arith.constant 0.000000e+00 : f32
    %30 = vector.shape_cast %21 : vector<1x128xi1> to vector<1x128xi1>
    %31 = vector.broadcast %30 : vector<1x128xi1> to vector<8x128xi1>
    %32 = vector.broadcast %cst_6 : f32 to vector<8x128xf32>
    %33 = arith.select %31, %13, %32 : vector<8x128xi1>, vector<8x128xf32>
    %c0_7 = arith.constant 0 : index
    %c0_8 = arith.constant 0 : index
    %c0_9 = arith.constant 0 : index
    %34 = vector.load %arg4[%c0_7, %c0_8, %c0_9] : memref<1x8x1xf32, #tpu.memory_space<vmem>>, vector<1x8x1xf32>
    %35 = vector.shape_cast %34 : vector<1x8x1xf32> to vector<8x1xf32>
    %36 = arith.mulf %13, %29 : vector<8x128xf32>
    %cst_10 = arith.constant dense<0.000000e+00> : vector<8xf32>
    %37 = vector.multi_reduction <add>, %36, %cst_10 [1] : vector<8x128xf32> to vector<8xf32>
    %38 = vector.shape_cast %37 : vector<8xf32> to vector<8x1xf32>
    %39 = arith.addf %35, %38 : vector<8x1xf32>
    %c0_11 = arith.constant 0 : index
    %c0_12 = arith.constant 0 : index
    %c0_13 = arith.constant 0 : index
    %40 = vector.load %arg4[%c0_11, %c0_12, %c0_13] : memref<1x8x1xf32, #tpu.memory_space<vmem>>, vector<1x8x1xf32>
    %41 = vector.shape_cast %40 : vector<1x8x1xf32> to vector<8x1xf32>
    %42 = vector.shape_cast %39 : vector<8x1xf32> to vector<1x8x1xf32>
    tpu.vector_store %arg4[%c0_11, %c0_12, %c0_13], %42 {strides = array<i32>} : memref<1x8x1xf32, #tpu.memory_space<vmem>>, vector<1x8x1xf32>,
    %c0_14 = arith.constant 0 : index
    %c0_15 = arith.constant 0 : index
    %c0_16 = arith.constant 0 : index
    %43 = vector.load %arg5[%c0_14, %c0_15, %c0_16] : memref<1x8x1xf32, #tpu.memory_space<vmem>>, vector<1x8x1xf32>
    %44 = vector.shape_cast %43 : vector<1x8x1xf32> to vector<8x1xf32>
    %45 = arith.mulf %33, %33 : vector<8x128xf32>
    %cst_17 = arith.constant dense<0.000000e+00> : vector<8xf32>
    %46 = vector.multi_reduction <add>, %45, %cst_17 [1] : vector<8x128xf32> to vector<8xf32>
    %47 = vector.shape_cast %46 : vector<8xf32> to vector<8x1xf32>
    %cst_18 = arith.constant dense<0.000000e+00> : vector<8xf32>
    %48 = vector.multi_reduction <add>, %29, %cst_18 [1] : vector<8x128xf32> to vector<8xf32>
    %49 = vector.shape_cast %48 : vector<8xf32> to vector<8x1xf32>
    %50 = arith.addf %47, %49 : vector<8x1xf32>
    %51 = arith.addf %44, %50 : vector<8x1xf32>
    %c0_19 = arith.constant 0 : index
    %c0_20 = arith.constant 0 : index
    %c0_21 = arith.constant 0 : index
    %52 = vector.load %arg5[%c0_19, %c0_20, %c0_21] : memref<1x8x1xf32, #tpu.memory_space<vmem>>, vector<1x8x1xf32>
    %53 = vector.shape_cast %52 : vector<1x8x1xf32> to vector<8x1xf32>
    %54 = vector.shape_cast %51 : vector<8x1xf32> to vector<1x8x1xf32>
    tpu.vector_store %arg5[%c0_19, %c0_20, %c0_21], %54 {strides = array<i32>} : memref<1x8x1xf32, #tpu.memory_space<vmem>>, vector<1x8x1xf32>,
    return
  }
  func.func @transform_0(%arg0: i32, %arg1: i32) -> (i32, i32) {
    %c0_i32 = arith.constant 0 : i32
    %c0_i32_0 = arith.constant 0 : i32
    %c0_i32_1 = arith.constant 0 : i32
    return %c0_i32, %c0_i32_0 : i32, i32
  }
  func.func @transform_1(%arg0: i32, %arg1: i32) -> (i32, i32) {
    %c1_i32 = arith.constant 1 : i32
    %0 = arith.muli %arg0, %c1_i32 : i32
    %1 = arith.addi %0, %arg1 : i32
    %c0_i32 = arith.constant 0 : i32
    %c0_i32_0 = arith.constant 0 : i32
    return %c0_i32, %1 : i32, i32
  }
  func.func @transform_2(%arg0: i32, %arg1: i32) -> (i32, i32, i32) {
    %c0_i32 = arith.constant 0 : i32
    %c0_i32_0 = arith.constant 0 : i32
    %c0_i32_1 = arith.constant 0 : i32
    return %arg0, %c0_i32, %c0_i32_0 : i32, i32, i32
  }
  func.func @transform_3(%arg0: i32, %arg1: i32) -> (i32, i32, i32) {
    %c0_i32 = arith.constant 0 : i32
    %c0_i32_0 = arith.constant 0 : i32
    %c0_i32_1 = arith.constant 0 : i32
    return %arg0, %c0_i32, %c0_i32_0 : i32, i32, i32
  }
}

</mosaic_0001>

<bundles_post_ra>
// kernel: tpu_custom_call.1
= control target key start
LH: loop header
LB: loop body
LE: loop exit
PB: predicated region body
PF: predicated region fallthrough
CT: control target
= control target key end

     0   :  { %9 = vsyncpa [#allocation3], 0  ;;  %s220_s0 = inlined_call_operand.hbm [shape: s32[1,128], index: 0, kind: input, shape index: {}]   ;;  %s221_s1 = inlined_call_operand.hbm [shape: f32[8,128], index: 1, kind: input, shape index: {}]   ;;  %s222_s2 = inlined_call_operand.vmem [shape: f32[1,8,1], index: 2, kind: output, shape index: {0}]   ;;  %s223_s3 = inlined_call_operand.vmem [shape: f32[1,8,1], index: 3, kind: output, shape index: {1}]  }
   0x1   :  { %10 = vsyncpa [#allocation5], 0  ;;  %s168_s12 = smov [#allocation2]   ;;  %s169_s14 = smov [#allocation4]  }
   0x2   :  { %s17_s13 = sshll.u32 %s168_s12, 4  ;;  %s30_s15 = sshll.u32 %s169_s14, 4  ;;  %s18_s13 = int_to_ptr.vmem [resolvable:$true] %s17_s13  ;;  %s31_s15 = int_to_ptr.vmem [resolvable:$true] %s30_s15 }
   0x3   :  { %s132_s16 = scalar_lea.vmem %s18_s13, 16  ;;  %s136_s17 = scalar_lea.vmem %s18_s13, 32 }
   0x4   :  { %p133_p0 = scmp.ne.s32.totalorder %s18_s13, %s132_s16  ;;  %p137_p1 = scmp.lt.s32.totalorder %s18_s13, %s18_s13 }
   0x5   :  { %p138_p2 = scmp.lt.s32.totalorder %s136_s17, %s132_s16 }
   0x7   :  { %p139_p3 = por %p138_p2, %p137_p1 }
   0x9   :  { %p140_p4 = pnand %p139_p3, %p133_p0 }
   0xb   :  { %143 = shalt.err (!%p140_p4)
}
   0xc   :  { %20 = dma.hbm_to_vmem [thread:$0]  %s220_s0, 16, %s18_s13, [#allocation3]  }
   0xd   :  { %s152_s20 = scalar_lea.vmem %s31_s15, 128  ;;  %p157_p6 = scmp.lt.s32.totalorder %s31_s15, %s31_s15 }
   0xe   :  { %p153_p5 = scmp.ne.s32.totalorder %s31_s15, %s152_s20  ;;  %p158_p7 = scmp.lt.s32.totalorder %s152_s20, %s152_s20 }
  0x10   :  { %p159_p8 = por %p158_p7, %p157_p6 }
  0x12   :  { %p160_p9 = pnand %p159_p8, %p153_p5 }
  0x14   :  { %163 = shalt.err (!%p160_p9)
}
  0x15   :  { %33 = dma.hbm_to_vmem [thread:$0]  %s221_s1, 128, %s31_s15, [#allocation5]  }
  0x16   :  { %164 = dma.done.wait [#allocation3], 16  }
  0x17   :  { %165 = vsyncadd [#allocation3], 4294967280 }
  0x18   :  { %166 = dma.done.wait [#allocation5], 128  }
  0x19   :  { %167 = vsyncadd [#allocation5], 4294967168  ;;  %vm45_vm0 = vcmask 7168   ;;  %v170_v0 = vmov 0.0   ;;  %v48_v1 = vld [vmem:[#allocation4] sm:$0xff]  ;;  %v73_v14 = vlaneseq  ;;  %v171_v21 = vmov 0  }
  0x1a   :  { %46 = vst.msk [vmem:[%s222_s2] sm:$0xff] %vm45_vm0, %v170_v0  ;;  %47 = vst.msk [vmem:[%s223_s3] sm:$0xff] %vm45_vm0, %v170_v0  ;;  %v49_v2 = vrot.slane %v48_v1, 4  ;;  %v71_v17 = vld [vmem:[#allocation2] sm:$0x1] }
  0x1b   :  { %v74_v18 = vshrl.u32 %v73_v14, 7  ;;  %vm72_vm1 = vcmp.ne.s32.totalorder %v71_v17, 255 }
  0x1c   :  { %v50_v3 = vmax.f32 %v48_v1, %v49_v2  ;;  %v80_v22 = vsel %vm72_vm1, 1, %v171_v21 }
  0x1d   :  { %v77_v20 = vsub.s32 0, %v74_v18 }
  0x1e   :  { %v51_v4 = vrot.slane %v50_v3, 2 }
  0x1f   :  { %v78_v23 = vrot.slane %v71_v17, %v77_v20  ;;  %v84_v24 = vrot.slane %v80_v22, %v77_v20 }
  0x20   :  { %v52_v5 = vmax.f32 %v50_v3, %v51_v4 }
  0x21   :  { %vm79_vm2 = vcmp.eq.s32.totalorder %v74_v18, %v78_v23  ;;  %vm85_vm3 = vcmp.eq.s32.totalorder %v84_v24, 1  ;;  %v89_v31 = vld [vmem:[%s222_s2] sm:$0xff] }
  0x22   :  { %v53_v6 = vrot.slane %v52_v5, 1  ;;  %vm86_vm4 = vmand %vm79_vm2, %vm85_vm3  ;;  %v96_v36 = vld [vmem:[%s223_s3] sm:$0xff] }
  0x23   :  { %v87_v26 = vsel %vm86_vm4, 1.0, %v170_v0 }
  0x24   :  { %v54_v7 = vmax.f32 %v52_v5, %v53_v6 }
  0x26   :  { %v55_v8 = vsub.f32 %v48_v1, %v54_v7 }
  0x28   :  { %v56_v9 = vmul.f32 1.442695, %v55_v8 }
  0x2a   :  { %120 = vpow2.f32 %v56_v9 }
  0x37   :  { %v121_v10 = vpop.eup %120 }
  0x38   :  { %v58_v11 = vrot.slane %v121_v10, 4 }
  0x3a   :  { %v59_v12 = vadd.f32 %v121_v10, %v58_v11 }
  0x3c   :  { %v60_v13 = vrot.slane %v59_v12, 2 }
  0x3e   :  { %v61_v15 = vadd.f32 %v60_v13, %v59_v12 }
  0x40   :  { %v62_v16 = vrot.slane %v61_v15, 1 }
  0x42   :  { %v63_v19 = vadd.f32 %v62_v16, %v61_v15 }
  0x44   :  { %122 = vrcp.f32 %v63_v19 }
  0x51   :  { %v123_v25 = vpop.eup %122 }
  0x52   :  { %v65_v27 = vmul.f32 %v123_v25, %v121_v10 }
  0x54   :  { %v88_v28 = vsel %vm85_vm3, %v65_v27, 0.0  ;;  %v90_v29 = vmul.f32 %v87_v26, %v65_v27 }
  0x55   :  { %v97_v30 = vmul.f32 %v88_v28, %v88_v28 }
  0x56   :  { %91 = vadd.xlane.f32.xlu1 %v90_v29 }
  0x57   :  { %98 = vadd.xlane.f32.xlu0 %v97_v30 }
  0x5b   :  { %100 = vadd.xlane.f32.xlu0 %v87_v26 }
  0xdf   :  { %v92_v32 = vpop.xlane.xlu1 %91 }
  0xe0   :  { %v99_v33 = vpop.xlane.xlu0 %98  ;;  %v93_v34 = vadd.f32 %v92_v32, %v89_v31 }
  0xe2   :  { %95 = vst.msk [vmem:[%s222_s2] sm:$0xff] %vm45_vm0, %v93_v34 }
  0xe4   :  { %v101_v35 = vpop.xlane.xlu0 %100 }
  0xe5   :  { %v102_v37 = vadd.f32 %v101_v35, %v99_v33 }
  0xe7   :  { %v103_v38 = vadd.f32 %v102_v37, %v96_v36 }
  0xe9   :  { %104 = vst.msk [vmem:[%s223_s3] sm:$0xff] %vm45_vm0, %v103_v38 }
  0xea   :  { %113 = vsyncpa [#allocation3], 1 }
  0xeb   :  { %114 = vsyncpa [#allocation5], 1 }

</bundles_post_ra>
